<compile_context>
chip_gen: v6e
topology: v6e:2x2x1
jax: 0.10.0
libtpu: 0.0.40
codegen_flags: <defaults>
</compile_context>

<pallas_src>
import functools

import jax
import jax.numpy as jnp
from jax.experimental import pallas as pl
from jax.experimental.pallas import tpu as pltpu


def _round_up(x, m):
    return ((x + m - 1) // m) * m


def _rnn_kernel(coeff_ref, ic_ref, tch_ref, wT_ref, out_ref, x_scratch,
                *, alpha, n_obs, t_block):
    """One grid step == one (batch block, time chunk) of `t_block` RNN steps.

    coeff_ref : SMEM (T_pad,)          f32       per-step teacher-forcing coefficient
    ic_ref    : VMEM (bb, Np)          f32       initial condition (zero-padded)
    tch_ref   : VMEM (Tb, bb, N_obs)   f32       teacher chunk (un-padded channels)
    wT_ref    : VMEM (Np, Np)          f32/bf16  transposed recurrent weights (w.T)
    out_ref   : VMEM (Tb, bb, Np)      out dtype output chunk
    x_scratch : VMEM (bb, Np)          f32       recurrent state carried across chunks
    """
    chunk = pl.program_id(1)
    one_minus_alpha = 1.0 - alpha

    def forward_model(x):
        # x + alpha*(-x + x @ w.T)  ==  (1-alpha)*x + alpha*(x @ w.T)   (folded MAC)
        rec = jnp.dot(x.astype(wT_ref.dtype), wT_ref[...],
                      preferred_element_type=jnp.float32)
        return one_minus_alpha * x + alpha * rec

    # Global step 0: emit the raw IC and seed the carried state with fm(x0).
    @pl.when(chunk == 0)
    def _():
        x0 = ic_ref[...]
        out_ref[0, :, :] = x0.astype(out_ref.dtype)
        x_scratch[...] = forward_model(x0)

    # Register-resident state: ONE VMEM read per chunk, ONE write at the end.
    x = x_scratch[...]
    t0 = chunk * t_block

    # Fully unrolled serial chain (t_block is a compile-time constant).
    for lt in range(t_block):
        c = coeff_ref[t0 + lt]
        # Register-level teacher blend on the first n_obs columns only.
        x_obs = c * tch_ref[lt] + (1.0 - c) * x[:, :n_obs]
        if n_obs < x.shape[-1]:
            x_gtf = jnp.concatenate([x_obs, x[:, n_obs:]], axis=-1)
        else:
            x_gtf = x_obs
        x_new = forward_model(x_gtf)

        if lt == 0:
            # Global step 0 (chunk 0, lt 0) was already produced by the prologue:
            # discard this step's result and keep out[0] == raw IC.
            x = jnp.where(chunk > 0, x_new, x)

            @pl.when(chunk > 0)
            def _():
                out_ref[0, :, :] = x_new.astype(out_ref.dtype)
        else:
            # Padded-tail steps of the last chunk land in out rows >= T_steps,
            # which the wrapper slices off (their coeffs are 0 — no NaN risk).
            x = x_new
            out_ref[lt, :, :] = x_new.astype(out_ref.dtype)

    x_scratch[...] = x


def rnn_forward(x_teacher, w, T_steps, *, N_obs, alpha, beta,
                use_stochastic_tf=True, key=None,
                t_block=16, batch_block=None, mxu_dtype=None,
                out_dtype=jnp.float32, pad_lanes=True):
    """Pallas equivalent of RNN.forward.

    x_teacher : (bs, N_obs, T) f32 teacher signal (PyTorch NCT layout), or
                (bs, N_obs) f32 IC-only (no teacher forcing), as in the original.
    w         : (N_neurons, N_neurons) f32
    returns   : (out (bs, N_neurons, T_steps) out_dtype, coeffs (T_steps,) f32)
    """
    T_steps = int(T_steps)
    bs = x_teacher.shape[0]
    N = w.shape[0]
    assert x_teacher.shape[1] == N_obs
    assert N_obs <= N

    # Lane/sublane padding for lane-dense stores and full MXU tiles.
    # Zero padding is exact: padded neuron columns and batch rows stay zero.
    Np = _round_up(N, 128) if pad_lanes else N
    bsp = _round_up(bs, 8) if pad_lanes else bs

    if batch_block is None:
        # v7x has 2 TensorCores: give the leading "parallel" axis extent >= 2
        # when the batch can be split into 8-aligned halves.
        batch_block = bsp // 2 if (bsp >= 16 and bsp % 16 == 0) else bsp
    assert bsp % batch_block == 0
    assert batch_block == bsp or batch_block % 8 == 0
    num_batch_blocks = bsp // batch_block

    if mxu_dtype is None:
        # bf16 weights halve the resident w.T footprint + read bandwidth (and are
        # effectively mandatory for N >= ~2048 on v7x's 64 MiB VMEM); keep f32
        # for small N so results match the f32 reference bit-tight.
        mxu_dtype = jnp.bfloat16 if N >= 512 else jnp.float32

    t_block = max(1, min(int(t_block), T_steps))
    num_chunks = -(-T_steps // t_block)
    T_pad = num_chunks * t_block

    # ----- teacher-forcing coefficients (host-side glue, deterministic) -----
    if x_teacher.ndim == 2:
        coeffs = jnp.zeros((T_steps,), jnp.float32)          # IC-only: no TF
    elif use_stochastic_tf:
        if key is None:
            key = jax.random.PRNGKey(1234)
        u = jax.random.uniform(key, (T_steps,))
        coeffs = (u < beta).astype(jnp.float32)               # {0,1} gate per step
    else:
        coeffs = jnp.full((T_steps,), beta, dtype=jnp.float32)
    coeffs = coeffs.at[0].set(0.0)                             # step 0 never uses teacher
    coeffs_pad = jnp.zeros((T_pad,), jnp.float32).at[:T_steps].set(coeffs)

    # ----- layout glue (production: pass time-major, pre-padded inputs) -----
    if x_teacher.ndim == 2:
        ic = x_teacher
        tch_tm = jnp.zeros((T_pad, bsp, N_obs), jnp.float32)
    else:
        ic = x_teacher[:, :, 0]
        tch_tm = jnp.zeros((T_pad, bsp, N_obs), jnp.float32).at[:T_steps, :bs, :].set(
            jnp.transpose(x_teacher[:, :, :T_steps], (2, 0, 1)).astype(jnp.float32))
    ic_pad = jnp.zeros((bsp, Np), jnp.float32).at[:bs, :N_obs].set(ic.astype(jnp.float32))
    w_pad = jnp.zeros((Np, Np), jnp.float32).at[:N, :N].set(w.astype(jnp.float32))
    wT = jnp.transpose(w_pad).astype(mxu_dtype)                # (Np, Np)

    # ----- VMEM budget: capped at chip capacity, no double-hedging ----------
    bbp = _round_up(batch_block, 8)
    Nop = _round_up(N_obs, 128)
    wbytes = jnp.dtype(mxu_dtype).itemsize
    obytes = jnp.dtype(out_dtype).itemsize
    est = (2 * t_block * bbp * Nop * 4         # teacher chunk (double-buffered)
           + 2 * t_block * bbp * Np * obytes   # output chunk  (double-buffered)
           + 1 * Np * Np * wbytes              # w.T           (single-buffered)
           + 1 * bbp * Np * 4                  # IC            (single-buffered)
           + bbp * Np * 4)                     # recurrent-state scratch
    try:
        vmem_cap = int(pltpu.get_tpu_info().vmem_capacity_bytes)
    except Exception:
        vmem_cap = 64 * 1024 * 1024            # conservative (v7x per-core)
    cap = max(16 * 1024 * 1024, vmem_cap - (4 << 20))
    vmem_limit = min(cap, max(32 * 1024 * 1024, est + (2 << 20)))

    kernel = functools.partial(_rnn_kernel, alpha=float(alpha), n_obs=int(N_obs),
                               t_block=int(t_block))

    out_tm = pl.pallas_call(
        kernel,
        grid=(num_batch_blocks, num_chunks),
        in_specs=[
            pl.BlockSpec(memory_space=pltpu.MemorySpace.SMEM),            # coeffs (T_pad,)
            pl.BlockSpec((batch_block, Np), lambda b, c: (b, 0),
                         pipeline_mode=pl.Buffered(1)),                    # IC (constant idx)
            pl.BlockSpec((t_block, batch_block, N_obs),
                         lambda b, c: (c, b, 0)),                          # teacher chunk
            pl.BlockSpec((Np, Np), lambda b, c: (0, 0),
                         pipeline_mode=pl.Buffered(1)),                    # w.T (constant idx)
        ],
        out_specs=pl.BlockSpec((t_block, batch_block, Np), lambda b, c: (c, b, 0)),
        out_shape=jax.ShapeDtypeStruct((T_pad, bsp, Np), out_dtype),
        scratch_shapes=[pltpu.VMEM((batch_block, Np), jnp.float32)],
        compiler_params=pltpu.CompilerParams(
            # batch blocks are independent -> parallel (v7x 2-TC split);
            # the time-chunk recurrence is sequential -> arbitrary.
            dimension_semantics=("parallel", "arbitrary"),
            vmem_limit_bytes=int(vmem_limit)),
    )(coeffs_pad, ic_pad, tch_tm, wT)

    # back to PyTorch layout, dropping padding: (T, bs, N) -> (bs, N, T)
    out = jnp.transpose(out_tm[:T_steps, :bs, :N], (1, 2, 0))
    return out, coeffs


def rnn_reference(x_teacher, w, T_steps, *, N_obs, alpha, coeffs):
    """Pure-JAX reference mirroring the PyTorch forward (given the same coeffs)."""
    bs = x_teacher.shape[0]
    N = w.shape[0]

    def fm(x):
        return x + alpha * (-x + x @ w.T)

    x = jnp.concatenate([x_teacher[:, :, 0],
                         jnp.zeros((bs, N - N_obs), jnp.float32)], axis=1)
    outs = [x]
    x = fm(x)
    for t in range(1, T_steps):
        x_tch = jnp.concatenate([x_teacher[:, :, t], x[:, N_obs:]], axis=1)
        c = coeffs[t]
        x_gtf = c * x_tch + (1.0 - c) * x
        x = fm(x_gtf)
        outs.append(x)
    return jnp.transpose(jnp.stack(outs), (1, 2, 0))


if __name__ == "__main__":
    # small, forward-consistent shapes (production: larger bs, 128-aligned N)
    bs, N_neurons, N_obs = 2, 32, 16
    alpha, beta = 0.01, 0.125

    root = jax.random.PRNGKey(0)
    k_w, k_x, k_tf = jax.random.split(root, 3)

    # deterministic parameter init: w ~ randn(N, N) * 0.1/sqrt(N)
    w = jax.random.normal(k_w, (N_neurons, N_neurons), jnp.float32) * (
        0.1 / jnp.sqrt(jnp.float32(N_neurons)))
    # teacher signal in PyTorch layout (bs, N_obs, T)
    x_teacher = jax.random.normal(k_x, (bs, N_obs, 8), jnp.float32)

    # 1) stochastic teacher forcing, 2 full chunks (exercises the state carry)
    out, coeffs = rnn_forward(x_teacher, w, 8, N_obs=N_obs, alpha=alpha, beta=beta,
                              use_stochastic_tf=True, key=k_tf, t_block=4)
    out = jax.block_until_ready(out)
    ref = rnn_reference(x_teacher, w, 8, N_obs=N_obs, alpha=alpha, coeffs=coeffs)
    assert out.shape == (bs, N_neurons, 8)
    assert jnp.allclose(out, ref, atol=1e-5, rtol=1e-5), "mismatch (stochastic TF)"

    # 2) deterministic beta-blend, ragged T (exercises the padded tail)
    out2, coeffs2 = rnn_forward(x_teacher, w, 7, N_obs=N_obs, alpha=alpha, beta=beta,
                                use_stochastic_tf=False, t_block=4)
    out2 = jax.block_until_ready(out2)
    ref2 = rnn_reference(x_teacher, w, 7, N_obs=N_obs, alpha=alpha, coeffs=coeffs2)
    assert out2.shape == (bs, N_neurons, 7)
    assert jnp.allclose(out2, ref2, atol=1e-5, rtol=1e-5), "mismatch (deterministic TF)"

    # 3) bf16 MXU weights (f32 state, f32 accumulate): looser tolerance
    out3, coeffs3 = rnn_forward(x_teacher, w, 8, N_obs=N_obs, alpha=alpha, beta=beta,
                                use_stochastic_tf=True, key=k_tf, t_block=8,
                                mxu_dtype=jnp.bfloat16)
    out3 = jax.block_until_ready(out3)
    ref3 = rnn_reference(x_teacher, w, 8, N_obs=N_obs, alpha=alpha, coeffs=coeffs3)
    assert out3.shape == (bs, N_neurons, 8)
    assert jnp.allclose(out3, ref3, atol=1e-3, rtol=1e-2), "mismatch (bf16 weights)"

    print("KERNEL_OK")
</pallas_src>

<mosaic_0001>
module attributes {stable_mosaic.version = 11 : i64} {
  func.func @_rnn_kernel(%arg0: i32, %arg1: i32, %arg2: memref<8xf32, #tpu.memory_space<smem>>, %arg3: memref<8x128xf32, #tpu.memory_space<vmem>>, %arg4: memref<4x8x16xf32, #tpu.memory_space<vmem>>, %arg5: memref<128x128xf32, #tpu.memory_space<vmem>>, %arg6: memref<4x8x128xf32, #tpu.memory_space<vmem>>, %arg7: memref<8x128xf32, #tpu.memory_space<vmem>>) attributes {dimension_semantics = [#tpu.dimension_semantics<parallel>, #tpu.dimension_semantics<arbitrary>], iteration_bounds = array<i64: 1, 2>, scalar_prefetch = 0 : i64, scratch_operands = 1 : i64, tpu.core_type = #tpu.core_type<tc>, window_params = [{transform_indices = @transform_0, window_bounds = array<i64: 8>}, {pipeline_mode = #tpu.pipeline_mode<synchronous>, transform_indices = @transform_1, window_bounds = array<i64: 8, 128>}, {transform_indices = @transform_2, window_bounds = array<i64: 4, 8, 16>}, {pipeline_mode = #tpu.pipeline_mode<synchronous>, transform_indices = @transform_3, window_bounds = array<i64: 128, 128>}, {transform_indices = @transform_4, window_bounds = array<i64: 4, 8, 128>}]} {
    %c0_i32 = arith.constant 0 : i32
    %0 = arith.cmpi eq, %arg1, %c0_i32 : i32
    %1 = arith.extui %0 : i1 to i32
    %c0_i32_0 = arith.constant 0 : i32
    %2 = arith.cmpi ne, %1, %c0_i32_0 : i32
    scf.if %2 {
      %c0_49 = arith.constant 0 : index
      %c0_50 = arith.constant 0 : index
      %104 = vector.load %arg3[%c0_49, %c0_50] : memref<8x128xf32, #tpu.memory_space<vmem>>, vector<8x128xf32>
      %c0_51 = arith.constant 0 : index
      %c0_52 = arith.constant 0 : index
      %c0_53 = arith.constant 0 : index
      %105 = vector.load %arg6[%c0_51, %c0_52, %c0_53] : memref<4x8x128xf32, #tpu.memory_space<vmem>>, vector<1x8x128xf32>
      %106 = vector.shape_cast %105 : vector<1x8x128xf32> to vector<8x128xf32>
      %107 = vector.shape_cast %104 : vector<8x128xf32> to vector<1x8x128xf32>
      tpu.vector_store %arg6[%c0_51, %c0_52, %c0_53], %107 {strides = array<i32>} : memref<4x8x128xf32, #tpu.memory_space<vmem>>, vector<1x8x128xf32>,
      %c0_54 = arith.constant 0 : index
      %c0_55 = arith.constant 0 : index
      %108 = vector.load %arg5[%c0_54, %c0_55] : memref<128x128xf32, #tpu.memory_space<vmem>>, vector<128x128xf32>
      %cst_56 = arith.constant dense<0.000000e+00> : vector<8x128xf32>
      %109 = tpu.matmul %104, %108, %cst_56 {dimension_numbers = #tpu.dot_dimension_numbers<[1], [0], [0], [1], [0, 0, 1, 1], [], []>} : vector<8x128xf32>, vector<128x128xf32>, vector<8x128xf32> -> vector<8x128xf32>
      %cst_57 = arith.constant 9.900000e-01 : f32
      %110 = vector.broadcast %cst_57 : f32 to vector<8x128xf32>
      %111 = arith.mulf %110, %104 : vector<8x128xf32>
      %cst_58 = arith.constant 0.00999999977 : f32
      %112 = vector.broadcast %cst_58 : f32 to vector<8x128xf32>
      %113 = arith.mulf %112, %109 : vector<8x128xf32>
      %114 = arith.addf %111, %113 : vector<8x128xf32>
      %c0_59 = arith.constant 0 : index
      %c0_60 = arith.constant 0 : index
      %115 = vector.load %arg7[%c0_59, %c0_60] : memref<8x128xf32, #tpu.memory_space<vmem>>, vector<8x128xf32>
      tpu.vector_store %arg7[%c0_59, %c0_60], %114 {strides = array<i32>} : memref<8x128xf32, #tpu.memory_space<vmem>>, vector<8x128xf32>,
    } else {
    }
    %c0 = arith.constant 0 : index
    %c0_1 = arith.constant 0 : index
    %3 = vector.load %arg7[%c0, %c0_1] : memref<8x128xf32, #tpu.memory_space<vmem>>, vector<8x128xf32>
    %c4_i32 = arith.constant 4 : i32
    %4 = arith.muli %arg1, %c4_i32 : i32
    %c0_i32_2 = arith.constant 0 : i32
    %5 = arith.addi %4, %c0_i32_2 : i32
    %6 = arith.index_cast %5 : i32 to index
    %7 = memref.load %arg2[%6] : memref<8xf32, #tpu.memory_space<smem>>
    %c0_3 = arith.constant 0 : index
    %c0_4 = arith.constant 0 : index
    %c0_5 = arith.constant 0 : index
    %8 = vector.load %arg4[%c0_3, %c0_4, %c0_5] : memref<4x8x16xf32, #tpu.memory_space<vmem>>, vector<1x8x16xf32>
    %9 = vector.shape_cast %8 : vector<1x8x16xf32> to vector<8x16xf32>
    %10 = vector.broadcast %7 : f32 to vector<8x16xf32>
    %11 = arith.mulf %10, %9 : vector<8x16xf32>
    %cst = arith.constant 1.000000e+00 : f32
    %12 = arith.subf %cst, %7 : f32
    %13 = vector.extract_strided_slice %3 {offsets = [0, 0], sizes = [8, 16], strides = [1, 1]} : vector<8x128xf32> to vector<8x16xf32>
    %14 = vector.broadcast %12 : f32 to vector<8x16xf32>
    %15 = arith.mulf %14, %13 : vector<8x16xf32>
    %16 = arith.addf %11, %15 : vector<8x16xf32>
    %17 = vector.extract_strided_slice %3 {offsets = [0, 16], sizes = [8, 112], strides = [1, 1]} : vector<8x128xf32> to vector<8x112xf32>
    %18 = tpu.concatenate %16, %17 in 1 : vector<8x16xf32>, vector<8x112xf32> -> vector<8x128xf32>
    %c0_6 = arith.constant 0 : index
    %c0_7 = arith.constant 0 : index
    %19 = vector.load %arg5[%c0_6, %c0_7] : memref<128x128xf32, #tpu.memory_space<vmem>>, vector<128x128xf32>
    %cst_8 = arith.constant dense<0.000000e+00> : vector<8x128xf32>
    %20 = tpu.matmul %18, %19, %cst_8 {dimension_numbers = #tpu.dot_dimension_numbers<[1], [0], [0], [1], [0, 0, 1, 1], [], []>} : vector<8x128xf32>, vector<128x128xf32>, vector<8x128xf32> -> vector<8x128xf32>
    %cst_9 = arith.constant 9.900000e-01 : f32
    %21 = vector.broadcast %cst_9 : f32 to vector<8x128xf32>
    %22 = arith.mulf %21, %18 : vector<8x128xf32>
    %cst_10 = arith.constant 0.00999999977 : f32
    %23 = vector.broadcast %cst_10 : f32 to vector<8x128xf32>
    %24 = arith.mulf %23, %20 : vector<8x128xf32>
    %25 = arith.addf %22, %24 : vector<8x128xf32>
    %c0_i32_11 = arith.constant 0 : i32
    %26 = arith.cmpi sgt, %arg1, %c0_i32_11 : i32
    %27 = arith.select %26, %25, %3 : vector<8x128xf32>
    %c0_i32_12 = arith.constant 0 : i32
    %28 = arith.cmpi sgt, %arg1, %c0_i32_12 : i32
    %29 = arith.extui %28 : i1 to i32
    %c0_i32_13 = arith.constant 0 : i32
    %30 = arith.cmpi ne, %29, %c0_i32_13 : i32
    scf.if %30 {
      %c0_49 = arith.constant 0 : index
      %c0_50 = arith.constant 0 : index
      %c0_51 = arith.constant 0 : index
      %104 = vector.load %arg6[%c0_49, %c0_50, %c0_51] : memref<4x8x128xf32, #tpu.memory_space<vmem>>, vector<1x8x128xf32>
      %105 = vector.shape_cast %104 : vector<1x8x128xf32> to vector<8x128xf32>
      %106 = vector.shape_cast %25 : vector<8x128xf32> to vector<1x8x128xf32>
      tpu.vector_store %arg6[%c0_49, %c0_50, %c0_51], %106 {strides = array<i32>} : memref<4x8x128xf32, #tpu.memory_space<vmem>>, vector<1x8x128xf32>,
    } else {
    }
    %c1_i32 = arith.constant 1 : i32
    %31 = arith.addi %4, %c1_i32 : i32
    %32 = arith.index_cast %31 : i32 to index
    %33 = memref.load %arg2[%32] : memref<8xf32, #tpu.memory_space<smem>>
    %c1 = arith.constant 1 : index
    %c0_14 = arith.constant 0 : index
    %c0_15 = arith.constant 0 : index
    %34 = vector.load %arg4[%c1, %c0_14, %c0_15] : memref<4x8x16xf32, #tpu.memory_space<vmem>>, vector<1x8x16xf32>
    %35 = vector.shape_cast %34 : vector<1x8x16xf32> to vector<8x16xf32>
    %36 = vector.broadcast %33 : f32 to vector<8x16xf32>
    %37 = arith.mulf %36, %35 : vector<8x16xf32>
    %cst_16 = arith.constant 1.000000e+00 : f32
    %38 = arith.subf %cst_16, %33 : f32
    %39 = vector.extract_strided_slice %27 {offsets = [0, 0], sizes = [8, 16], strides = [1, 1]} : vector<8x128xf32> to vector<8x16xf32>
    %40 = vector.broadcast %38 : f32 to vector<8x16xf32>
    %41 = arith.mulf %40, %39 : vector<8x16xf32>
    %42 = arith.addf %37, %41 : vector<8x16xf32>
    %43 = vector.extract_strided_slice %27 {offsets = [0, 16], sizes = [8, 112], strides = [1, 1]} : vector<8x128xf32> to vector<8x112xf32>
    %44 = tpu.concatenate %42, %43 in 1 : vector<8x16xf32>, vector<8x112xf32> -> vector<8x128xf32>
    %c0_17 = arith.constant 0 : index
    %c0_18 = arith.constant 0 : index
    %45 = vector.load %arg5[%c0_17, %c0_18] : memref<128x128xf32, #tpu.memory_space<vmem>>, vector<128x128xf32>
    %cst_19 = arith.constant dense<0.000000e+00> : vector<8x128xf32>
    %46 = tpu.matmul %44, %45, %cst_19 {dimension_numbers = #tpu.dot_dimension_numbers<[1], [0], [0], [1], [0, 0, 1, 1], [], []>} : vector<8x128xf32>, vector<128x128xf32>, vector<8x128xf32> -> vector<8x128xf32>
    %cst_20 = arith.constant 9.900000e-01 : f32
    %47 = vector.broadcast %cst_20 : f32 to vector<8x128xf32>
    %48 = arith.mulf %47, %44 : vector<8x128xf32>
    %cst_21 = arith.constant 0.00999999977 : f32
    %49 = vector.broadcast %cst_21 : f32 to vector<8x128xf32>
    %50 = arith.mulf %49, %46 : vector<8x128xf32>
    %51 = arith.addf %48, %50 : vector<8x128xf32>
    %c1_22 = arith.constant 1 : index
    %c0_23 = arith.constant 0 : index
    %c0_24 = arith.constant 0 : index
    %52 = vector.load %arg6[%c1_22, %c0_23, %c0_24] : memref<4x8x128xf32, #tpu.memory_space<vmem>>, vector<1x8x128xf32>
    %53 = vector.shape_cast %52 : vector<1x8x128xf32> to vector<8x128xf32>
    %54 = vector.shape_cast %51 : vector<8x128xf32> to vector<1x8x128xf32>
    tpu.vector_store %arg6[%c1_22, %c0_23, %c0_24], %54 {strides = array<i32>} : memref<4x8x128xf32, #tpu.memory_space<vmem>>, vector<1x8x128xf32>,
    %c2_i32 = arith.constant 2 : i32
    %55 = arith.addi %4, %c2_i32 : i32
    %56 = arith.index_cast %55 : i32 to index
    %57 = memref.load %arg2[%56] : memref<8xf32, #tpu.memory_space<smem>>
    %c2 = arith.constant 2 : index
    %c0_25 = arith.constant 0 : index
    %c0_26 = arith.constant 0 : index
    %58 = vector.load %arg4[%c2, %c0_25, %c0_26] : memref<4x8x16xf32, #tpu.memory_space<vmem>>, vector<1x8x16xf32>
    %59 = vector.shape_cast %58 : vector<1x8x16xf32> to vector<8x16xf32>
    %60 = vector.broadcast %57 : f32 to vector<8x16xf32>
    %61 = arith.mulf %60, %59 : vector<8x16xf32>
    %cst_27 = arith.constant 1.000000e+00 : f32
    %62 = arith.subf %cst_27, %57 : f32
    %63 = vector.extract_strided_slice %51 {offsets = [0, 0], sizes = [8, 16], strides = [1, 1]} : vector<8x128xf32> to vector<8x16xf32>
    %64 = vector.broadcast %62 : f32 to vector<8x16xf32>
    %65 = arith.mulf %64, %63 : vector<8x16xf32>
    %66 = arith.addf %61, %65 : vector<8x16xf32>
    %67 = vector.extract_strided_slice %51 {offsets = [0, 16], sizes = [8, 112], strides = [1, 1]} : vector<8x128xf32> to vector<8x112xf32>
    %68 = tpu.concatenate %66, %67 in 1 : vector<8x16xf32>, vector<8x112xf32> -> vector<8x128xf32>
    %c0_28 = arith.constant 0 : index
    %c0_29 = arith.constant 0 : index
    %69 = vector.load %arg5[%c0_28, %c0_29] : memref<128x128xf32, #tpu.memory_space<vmem>>, vector<128x128xf32>
    %cst_30 = arith.constant dense<0.000000e+00> : vector<8x128xf32>
    %70 = tpu.matmul %68, %69, %cst_30 {dimension_numbers = #tpu.dot_dimension_numbers<[1], [0], [0], [1], [0, 0, 1, 1], [], []>} : vector<8x128xf32>, vector<128x128xf32>, vector<8x128xf32> -> vector<8x128xf32>
    %cst_31 = arith.constant 9.900000e-01 : f32
    %71 = vector.broadcast %cst_31 : f32 to vector<8x128xf32>
    %72 = arith.mulf %71, %68 : vector<8x128xf32>
    %cst_32 = arith.constant 0.00999999977 : f32
    %73 = vector.broadcast %cst_32 : f32 to vector<8x128xf32>
    %74 = arith.mulf %73, %70 : vector<8x128xf32>
    %75 = arith.addf %72, %74 : vector<8x128xf32>
    %c2_33 = arith.constant 2 : index
    %c0_34 = arith.constant 0 : index
    %c0_35 = arith.constant 0 : index
    %76 = vector.load %arg6[%c2_33, %c0_34, %c0_35] : memref<4x8x128xf32, #tpu.memory_space<vmem>>, vector<1x8x128xf32>
    %77 = vector.shape_cast %76 : vector<1x8x128xf32> to vector<8x128xf32>
    %78 = vector.shape_cast %75 : vector<8x128xf32> to vector<1x8x128xf32>
    tpu.vector_store %arg6[%c2_33, %c0_34, %c0_35], %78 {strides = array<i32>} : memref<4x8x128xf32, #tpu.memory_space<vmem>>, vector<1x8x128xf32>,
    %c3_i32 = arith.constant 3 : i32
    %79 = arith.addi %4, %c3_i32 : i32
    %80 = arith.index_cast %79 : i32 to index
    %81 = memref.load %arg2[%80] : memref<8xf32, #tpu.memory_space<smem>>
    %c3 = arith.constant 3 : index
    %c0_36 = arith.constant 0 : index
    %c0_37 = arith.constant 0 : index
    %82 = vector.load %arg4[%c3, %c0_36, %c0_37] : memref<4x8x16xf32, #tpu.memory_space<vmem>>, vector<1x8x16xf32>
    %83 = vector.shape_cast %82 : vector<1x8x16xf32> to vector<8x16xf32>
    %84 = vector.broadcast %81 : f32 to vector<8x16xf32>
    %85 = arith.mulf %84, %83 : vector<8x16xf32>
    %cst_38 = arith.constant 1.000000e+00 : f32
    %86 = arith.subf %cst_38, %81 : f32
    %87 = vector.extract_strided_slice %75 {offsets = [0, 0], sizes = [8, 16], strides = [1, 1]} : vector<8x128xf32> to vector<8x16xf32>
    %88 = vector.broadcast %86 : f32 to vector<8x16xf32>
    %89 = arith.mulf %88, %87 : vector<8x16xf32>
    %90 = arith.addf %85, %89 : vector<8x16xf32>
    %91 = vector.extract_strided_slice %75 {offsets = [0, 16], sizes = [8, 112], strides = [1, 1]} : vector<8x128xf32> to vector<8x112xf32>
    %92 = tpu.concatenate %90, %91 in 1 : vector<8x16xf32>, vector<8x112xf32> -> vector<8x128xf32>
    %c0_39 = arith.constant 0 : index
    %c0_40 = arith.constant 0 : index
    %93 = vector.load %arg5[%c0_39, %c0_40] : memref<128x128xf32, #tpu.memory_space<vmem>>, vector<128x128xf32>
    %cst_41 = arith.constant dense<0.000000e+00> : vector<8x128xf32>
    %94 = tpu.matmul %92, %93, %cst_41 {dimension_numbers = #tpu.dot_dimension_numbers<[1], [0], [0], [1], [0, 0, 1, 1], [], []>} : vector<8x128xf32>, vector<128x128xf32>, vector<8x128xf32> -> vector<8x128xf32>
    %cst_42 = arith.constant 9.900000e-01 : f32
    %95 = vector.broadcast %cst_42 : f32 to vector<8x128xf32>
    %96 = arith.mulf %95, %92 : vector<8x128xf32>
    %cst_43 = arith.constant 0.00999999977 : f32
    %97 = vector.broadcast %cst_43 : f32 to vector<8x128xf32>
    %98 = arith.mulf %97, %94 : vector<8x128xf32>
    %99 = arith.addf %96, %98 : vector<8x128xf32>
    %c3_44 = arith.constant 3 : index
    %c0_45 = arith.constant 0 : index
    %c0_46 = arith.constant 0 : index
    %100 = vector.load %arg6[%c3_44, %c0_45, %c0_46] : memref<4x8x128xf32, #tpu.memory_space<vmem>>, vector<1x8x128xf32>
    %101 = vector.shape_cast %100 : vector<1x8x128xf32> to vector<8x128xf32>
    %102 = vector.shape_cast %99 : vector<8x128xf32> to vector<1x8x128xf32>
    tpu.vector_store %arg6[%c3_44, %c0_45, %c0_46], %102 {strides = array<i32>} : memref<4x8x128xf32, #tpu.memory_space<vmem>>, vector<1x8x128xf32>,
    %c0_47 = arith.constant 0 : index
    %c0_48 = arith.constant 0 : index
    %103 = vector.load %arg7[%c0_47, %c0_48] : memref<8x128xf32, #tpu.memory_space<vmem>>, vector<8x128xf32>
    tpu.vector_store %arg7[%c0_47, %c0_48], %99 {strides = array<i32>} : memref<8x128xf32, #tpu.memory_space<vmem>>, vector<8x128xf32>,
    return
  }
  func.func @transform_0(%arg0: i32, %arg1: i32) -> i32 {
    %c0_i32 = arith.constant 0 : i32
    %c0_i32_0 = arith.constant 0 : i32
    return %c0_i32 : i32
  }
  func.func @transform_1(%arg0: i32, %arg1: i32) -> (i32, i32) {
    %c0_i32 = arith.constant 0 : i32
    %c0_i32_0 = arith.constant 0 : i32
    return %arg0, %c0_i32 : i32, i32
  }
  func.func @transform_2(%arg0: i32, %arg1: i32) -> (i32, i32, i32) {
    %c0_i32 = arith.constant 0 : i32
    %c0_i32_0 = arith.constant 0 : i32
    return %arg1, %arg0, %c0_i32 : i32, i32, i32
  }
  func.func @transform_3(%arg0: i32, %arg1: i32) -> (i32, i32) {
    %c0_i32 = arith.constant 0 : i32
    %c0_i32_0 = arith.constant 0 : i32
    %c0_i32_1 = arith.constant 0 : i32
    return %c0_i32, %c0_i32_0 : i32, i32
  }
  func.func @transform_4(%arg0: i32, %arg1: i32) -> (i32, i32, i32) {
    %c0_i32 = arith.constant 0 : i32
    %c0_i32_0 = arith.constant 0 : i32
    return %arg1, %arg0, %c0_i32 : i32, i32, i32
  }
}

</mosaic_0001>

<bundles_post_ra>
// kernel: tpu_custom_call.1
= control target key start
LH: loop header
LB: loop body
LE: loop exit
PB: predicated region body
PF: predicated region fallthrough
CT: control target
= control target key end

     0   :  { %s1915_s0 = inlined_call_operand.hbm [shape: f32[8], index: 0, kind: input, shape index: {}]   ;;  %s1916_s1 = inlined_call_operand.hbm [shape: f32[8,128], index: 1, kind: input, shape index: {}]   ;;  %s1917_s2 = inlined_call_operand.hbm [shape: f32[8,8,16], index: 2, kind: input, shape index: {}]   ;;  %s1918_s3 = inlined_call_operand.hbm [shape: f32[128,128], index: 3, kind: input, shape index: {}]   ;;  %s1919_s4 = inlined_call_operand.hbm [shape: f32[8,8,128], index: 4, kind: output, shape index: {}]  }
   0x1   :  { %1924 = sst [smem:[#allocation17_spill]] %s1915_s0 }
   0x2   :  { %1925 = sst [smem:[#allocation18_spill]] %s1916_s1 }
   0x3   :  { %9 = vsyncpa [#allocation6], 0 }
   0x4   :  { %10 = vsyncpa [#allocation4], 0 }
   0x5   :  { %11 = vsyncpa [#allocation9], 0 }
   0x6   :  { %13 = vsyncpa [#allocation9 + $0x1], 0 }
   0x7   :  { %14 = vsyncpa [#allocation5], 0 }
   0x8   :  { %16 = vsyncpa [#allocation5 + $0x1], 0  ;;  %s1545_s15 = smov 0   ;;  %s1547_s16 = smov 0  }
   0x9   :  { %s1549_s17 = smov 0   ;;  %s1551_s18 = smov 0  }
   0xa   :  { %s1553_s19 = smov 0   ;;  %s1555_s20 = smov 0  }
   0xb LB: > { %s1576_s21 = sadd.s32 4294967295, %s1505_s20   ;;  %s930_s22 = sadd.s32 4294967294, %s1505_s20   ;;  %s1505_s20 = sphi %s1555_s20, %s22_s20   ;;  %s1501_s19 = sphi %s1553_s19, %s1950_s19   ;;  %s1497_s18 = sphi %s1551_s18, %s1949_s18   ;;  %s1493_s17 = sphi %s1549_s17, %s1948_s17   ;;  %s1489_s16 = sphi %s1547_s16, %s1947_s16   ;;  %s1485_s15 = sphi %s1545_s15, %s1946_s15  }
   0xc   : > { %p97_p0 = scmp.ne.s32.totalorder %s1493_s17, %s1489_s16  ;;  %p98_p1 = scmp.eq.s32.totalorder %s1505_s20, 0 }
   0xd   : > { %p103_p2 = scmp.ne.s32.totalorder %s1489_s16, %s1485_s15  ;;  %p1920_p3 = scmp.eq.s32.totalorder %s1576_s21, 0 }
   0xe   : > { %p1585_p4 = por %p98_p1, %p97_p0  ;;  %p150_p5 = scmp.eq.s32.totalorder %s1576_s21, 1 }
   0xf   : > { %p1592_p6 = por %p1920_p3, %p103_p2  ;;  %p156_p7 = scmp.eq.s32.totalorder %s930_s22, 1 }
  0x10   : > { %p1596_p8 = por %p150_p5, %p97_p0  ;;  %p931_p9 = scmp.ge.s32.totalorder %s1505_s20, 1 }
  0x11   : > { %p1601_p10 = por %p156_p7, %p103_p2  ;;  %p163_p11 = scmp.lt.s32.totalorder %s1505_s20, 3 }
  0x12   : > { %s1928_s25 = scalar_select %p1596_p8, 1, 0 }
  0x13   : > { %s1929_s26 = scalar_select %p1601_p10, 1, 0 }
  0x14   : > { %p1606_p12 = pnand %p931_p9, %p163_p11  ;;  %s1507_s28 = smov [#allocation10]  }
  0x15   : > { %s197_s29 = sshll.u32 %s1507_s28, 4  ;;  %p1258_p1 = scmp.lt.s32.totalorder %s1505_s20, 2  ;;  %s198_s29 = int_to_ptr.vmem [resolvable:$true] %s197_s29 }
  0x16   : > { %p1237_p13 = pneg %p1606_p12  ;;  %s1333_s6 = scalar_lea.vmem %s198_s29, 2048 }
  0x17   : > { %p1622_p2 = pnand %p1258_p1, %p1585_p4  ;;  %p1334_p9 = scmp.ne.s32.totalorder %s198_s29, %s1333_s6 }
  0x18   : > { %p1616_p5 = pnand %p1237_p13, %p1920_p3  ;;  %p1341_p10 = scmp.lt.s32.totalorder %s198_s29, %s198_s29 }
  0x19   : > { %p1342_p13 = scmp.lt.s32.totalorder %s1333_s6, %s1333_s6 }
  0x1a   : > { %p1324_p7 = pneg %p1616_p5 }
  0x1b   : > { %p1343_p3 = por %p1342_p13, %p1341_p10 }
  0x1c   : > { %p1336_p11 = pnand %p1334_p9, %p1324_p7 }
  0x1e   : > { %p1337_p0 = pneg %p1336_p11 }
  0x20   : > { %p1344_p8 = pnand %p1343_p3, %p1337_p0 }
  0x22   : > { %1347 = shalt.err (!%p1344_p8)
}
  0x23   : > { %s1922_s7 = smov 128   ;;  %s1923_s8 = smov 8  }
  0x24   : > { %1246 = dma.hbm_to_vmem [thread:$0]  (!%p1616_p5), %s1918_s3, 2048, %s198_s29, [#allocation9], %s1922_s7, %s1922_s7, %s1923_s8  }
  0x25   : > { %s1510_s11 = smov [#allocation3]   ;;  %s1933_s0 = sld [smem:[#allocation17_spill]] }
  0x26   : > { %s1511_s14 = smov [#allocation7]  }
  0x27   : > { %s187_s22 = sshll.u32 %s1511_s14, 4  ;;  %s188_s22 = int_to_ptr.vmem [resolvable:$true] %s187_s22 }
  0x28   : > { %s1370_s23 = scalar_lea.vmem %s188_s22, 128  ;;  %p1378_p10 = scmp.lt.s32.totalorder %s188_s22, %s188_s22 }
  0x29   : > { %p1371_p3 = scmp.ne.s32.totalorder %s188_s22, %s1370_s23  ;;  %p1379_p0 = scmp.lt.s32.totalorder %s1370_s23, %s1370_s23 }
  0x2b   : > { %1240 = dma.hbm_to_smem (!%p1616_p5), %s1933_s0, 16, %s1510_s11, [#allocation6]  }
  0x2c   : > { %p1373_p4 = pnand %p1371_p3, %p1324_p7  ;;  %p1380_p1 = por %p1379_p0, %p1378_p10 }
  0x2e   : > { %p1374_p8 = pneg %p1373_p4 }
  0x30   : > { %p1381_p9 = pnand %p1380_p1, %p1374_p8 }
  0x32   : > { %1384 = shalt.err (!%p1381_p9)
}
  0x33   : > { %s1934_s1 = sld [smem:[#allocation18_spill]]  ;;  %s31_s6 = sadd.s32 1, %s1501_s19 }
  0x34   : > { %p32_p7 = scmp.ge.s32.totalorder %s31_s6, 2  ;;  %s90_s9 = sadd.s32 1, %s1493_s17 }
  0x35   : > { %s211_s10 = sand.u32 1, %s1505_s20   ;;  %s213_s11 = sand.u32 1, %s1493_s17  }
  0x36   : > { %s1952_s6 = smov (%p32_p7, %s31_s6), 0  ;;  %s936_s30 = sshll.u32 %s213_s11, 5 }
  0x37   : > { %s959_s12 = sshll.u32 %s1501_s19, 9  ;;  %s85_s13 = ssub.s32 %s1501_s19, %s1952_s6 }
  0x38   : > { %p88_p11 = scmp.eq.s32.totalorder %s85_s13, 0  ;;  %s222_s28 = scalar_lea.hbm %s1917_s2, %s959_s12 }
  0x39   : > { %1243 = dma.hbm_to_vmem [thread:$0]  (!%p1616_p5), %s1934_s1, 128, %s188_s22, [#allocation4]  }
  0x3a   : > { %s215_s29 = scalar_lea.vmem [#allocation8], %s936_s30  ;;  %s212_s8 = scalar_lea.sflag [#allocation9], %s211_s10 }
  0x3b   : > { %s223_s7 = sshll.u32 %s215_s29, 4  ;;  %p1387_p5 = pneg %p1622_p2  ;;  %s224_s7 = int_to_ptr.vmem [resolvable:$true] %s223_s7 }
  0x3c   : > { %s1665_s22 = scalar_select %p88_p11, %s1493_s17, %s90_s9  }
  0x3d   : > { %s1398_s0 = scalar_lea.vmem %s224_s7, 512  ;;  %s1512_s11 = smov [#allocation8]  }
  0x3e   : > { %p1399_p13 = scmp.ne.s32.totalorder %s224_s7, %s1398_s0  ;;  %s1403_s1 = sshll.u32 %s1512_s11, 4  ;;  %s1404_s1 = int_to_ptr.vmem [resolvable:$false] %s1403_s1 }
  0x3f   : > { %s1405_s13 = scalar_lea.vmem %s1404_s1, 1024  ;;  %p1406_p8 = scmp.lt.s32.totalorder %s224_s7, %s1404_s1 }
  0x40   : > { %p1401_p3 = pnand %p1399_p13, %p1387_p5  ;;  %p1407_p10 = scmp.lt.s32.totalorder %s1405_s13, %s1398_s0 }
  0x42   : > { %p1402_p4 = pneg %p1401_p3  ;;  %p1408_p0 = por %p1407_p10, %p1406_p8 }
  0x44   : > { %p1409_p1 = pnand %p1408_p0, %p1402_p4 }
  0x46   : > { %1412 = shalt.err (!%p1409_p1)
}
  0x47   : > { %s1935_s9 = smov 8   ;;  %s1936_s30 = smov 128  }
  0x48   : > { %1250 = dma.hbm_to_vmem [thread:$0]  (!%p1622_p2), %s222_s28, 512, %s224_s7, %s212_s8, %s1936_s30, %s1936_s30, %s1935_s9  }
  0x49   : > { %235 = sbr.rel (%p1606_p12) target bundleno = 1209 (0x4b9), region = 36  ;;  %p1937_p9 = scmp.eq.s32.totalorder (!%p1606_p12), %s1576_s21, 0 }
  0x4e   : > { %1464 = dma.done.wait (%p1937_p9), [#allocation6], 16   ;;  %p1938_p7 = pmov %p1937_p9 }
  0x50   : > { %1466 = vsyncadd (%p1938_p7), [#allocation6], 4294967280  ;;  %p1939_p11 = pmov %p1938_p7 }
  0x51   : > { %p1940_p5 = pmov %p1938_p7 }
  0x52   : > { %1468 = dma.done.wait (%p1939_p11), [#allocation4], 128  }
  0x53   : > { %1470 = vsyncadd (%p1940_p5), [#allocation4], 4294967168  ;;  %s245_s0 = sand.u32 1, %s1576_s21   ;;  %s247_s1 = sand.u32 1, %s1489_s16  }
  0x54   : > { %s942_s27 = sshll.u32 %s247_s1, 5  ;;  %s246_s5 = scalar_lea.sflag [#allocation9], %s245_s0 }
  0x55   : > { %s1688_s7 = scalar_lea.vmem [#allocation8], %s942_s27 }
  0x56   : > { %1472 = dma.done.wait (%p1592_p6), %s246_s5, 512  }
  0x57   : > { %1474 = vsyncadd (%p1592_p6), %s246_s5, 4294966784  ;;  %p1941_p12 = pmov %p1940_p5 }
  0x58   : > { %p1942_p2 = pmov %p1940_p5 }
  0x59   : > { %1476 = dma.done.wait (%p1941_p12), [#allocation9], 2048  }
  0x5a   : > { %1478 = vsyncadd (%p1942_p2), [#allocation9], 4294965248 }
  0x5b   : > { %258 = sfence }
  0x5c   : > { %s1698_s8 = scalar_lea.vmem [#allocation11], %s942_s27  ;;  %p945_p13 = scmp.ne.s32.totalorder %s1497_s18, 0 }
  0x5e   : > { %284 = sbr.rel (%p945_p13) target bundleno = 330 (0x14a), region = 56 }
  0x63   : > { %v302_v0 = vld [vmem:[#allocation10 + $0x78] sm:$0xff]  ;;  %v1513_v1 = vmov 0.0   ;;  %v301_v2 = vld [vmem:[#allocation10 + $0x70] sm:$0xff]  ;;  %vm1514_vm0 = vmmov 0   ;;  %v300_v3 = vld [vmem:[#allocation10 + $0x68] sm:$0xff] }
  0x64   : > { %1046 = vmatprep.subr.mxu0 %v1513_v1  ;;  %1078 = vmatprep.mubr.msk.f32.mxu0 %vm1514_vm0, %v1513_v1  ;;  %v299_v4 = vld [vmem:[#allocation10 + $0x60] sm:$0xff]  ;;  %v285_v5 = vld [vmem:[#allocation7] sm:$0xff]  ;;  %v297_v7 = vld [vmem:[#allocation10 + $0x50] sm:$0xff] }
  0x65   : > { %1047 = vmatpush3.msra.mxu0 %v302_v0  ;;  %286 = vst [vmem:[%s1698_s8] sm:$0xff] %v285_v5  ;;  %v298_v6 = vld [vmem:[#allocation10 + $0x58] sm:$0xff]  ;;  %v296_v8 = vld [vmem:[#allocation10 + $0x48] sm:$0xff]  ;;  %v295_v9 = vld [vmem:[#allocation10 + $0x40] sm:$0xff]  ;;  %v373_v18 = vmul.f32 0.99, %v285_v5 }
  0x66   : > { %1048 = vmatprep.subr.mxu0 %v1513_v1  ;;  %v294_v10 = vld [vmem:[#allocation10 + $0x38] sm:$0xff]  ;;  %v293_v11 = vld [vmem:[#allocation10 + $0x30] sm:$0xff]  ;;  %v292_v12 = vld [vmem:[#allocation10 + $0x28] sm:$0xff] }
  0x67   : > { %1049 = vmatpush3.msra.mxu0 %v301_v2  ;;  %v291_v13 = vld [vmem:[#allocation10 + $0x20] sm:$0xff]  ;;  %v290_v14 = vld [vmem:[#allocation10 + $0x18] sm:$0xff]  ;;  %v289_v15 = vld [vmem:[#allocation10 + $0x10] sm:$0xff] }
  0x68   : > { %1050 = vmatprep.subr.mxu0 %v1513_v1  ;;  %v288_v16 = vld [vmem:[#allocation10 + $0x8] sm:$0xff]  ;;  %v287_v17 = vld [vmem:[#allocation10] sm:$0xff] }
  0x69   : > { %1051 = vmatpush3.msra.mxu0 %v300_v3 }
  0x6a   : > { %1052 = vmatprep.subr.mxu0 %v1513_v1 }
  0x6b   : > { %1053 = vmatpush3.msra.mxu0 %v299_v4 }
  0x6c   : > { %1054 = vmatprep.subr.mxu0 %v1513_v1 }
  0x6d   : > { %1055 = vmatpush3.msra.mxu0 %v298_v6 }
  0x6e   : > { %1056 = vmatprep.subr.mxu0 %v1513_v1 }
  0x6f   : > { %1057 = vmatpush3.msra.mxu0 %v297_v7 }
  0x70   : > { %1058 = vmatprep.subr.mxu0 %v1513_v1 }
  0x71   : > { %1059 = vmatpush3.msra.mxu0 %v296_v8 }
  0x72   : > { %1060 = vmatprep.subr.mxu0 %v1513_v1 }
  0x73   : > { %1061 = vmatpush3.msra.mxu0 %v295_v9 }
  0x74   : > { %1062 = vmatprep.subr.mxu0 %v1513_v1 }
  0x75   : > { %1063 = vmatpush3.msra.mxu0 %v294_v10 }
  0x76   : > { %1064 = vmatprep.subr.mxu0 %v1513_v1 }
  0x77   : > { %1065 = vmatpush3.msra.mxu0 %v293_v11 }
  0x78   : > { %1066 = vmatprep.subr.mxu0 %v1513_v1 }
  0x79   : > { %1067 = vmatpush3.msra.mxu0 %v292_v12 }
  0x7a   : > { %1068 = vmatprep.subr.mxu0 %v1513_v1 }
  0x7b   : > { %1069 = vmatpush3.msra.mxu0 %v291_v13 }
  0x7c   : > { %1070 = vmatprep.subr.mxu0 %v1513_v1 }
  0x7d   : > { %1071 = vmatpush3.msra.mxu0 %v290_v14 }
  0x7e   : > { %1072 = vmatprep.subr.mxu0 %v1513_v1 }
  0x7f   : > { %1073 = vmatpush3.msra.mxu0 %v289_v15 }
  0x80   : > { %1074 = vmatprep.subr.mxu0 %v1513_v1 }
  0x81   : > { %1075 = vmatpush3.msra.mxu0 %v288_v16 }
  0x82   : > { %1076 = vmatprep.subr.mxu0 %v1513_v1 }
  0x83   : > { %1077 = vmatpush3.msra.mxu0 %v287_v17 }
  0x84   : > { %1079 = vmatmul.mubr.f32.vlgmr.msra.gmra.mxu0 %v285_v5 }
 0x144   : > { %v369_v19 = vpop.f32.mrf.mxu0 }
 0x145   : > { %v374_v20 = vmul.f32 0.01, %v369_v19 }
 0x146   : > { %v1080_v21 = vpop.f32.mrf.mxu0 }
 0x147   : > { %v375_v22 = vadd.f32 %v374_v20, %v373_v18 }
 0x149   : > { %376 = vst [vmem:[#allocation2] sm:$0xff] %v375_v22 }
 0x14a PF: > { %v404_v23 = vld [vmem:[#allocation10 + $0x78] sm:$0xff]  ;;  %v1515_v24 = vmov 0.0   ;;  %v403_v25 = vld [vmem:[#allocation10 + $0x70] sm:$0xff]  ;;  %vm1516_vm1 = vmmov 0   ;;  %v402_v26 = vld [vmem:[#allocation10 + $0x68] sm:$0xff]  ;;  %s1707_s21 = sshll.u32 %s1497_s18, 2 }
 0x14b   : > { %1081 = vmatprep.subr.mxu0 %v1515_v24  ;;  %1113 = vmatprep.mubr.msk.f32.mxu0 %vm1516_vm1, %v1515_v24  ;;  %v401_v27 = vld [vmem:[#allocation10 + $0x60] sm:$0xff]  ;;  %v400_v28 = vld [vmem:[#allocation10 + $0x58] sm:$0xff]  ;;  %s379_s24 = sld [smem:[#allocation3 + %s1707_s21]]  ;;  %v399_v29 = vld [vmem:[#allocation10 + $0x50] sm:$0xff]  ;;  %vm387_vm2 = vcmask 130048   ;;  %p478_p6 = scmp.gt.s32.totalorder %s1497_s18, 0 }
 0x14c   : > { %1082 = vmatpush3.msra.mxu0 %v404_v23  ;;  %v398_v30 = vld [vmem:[#allocation10 + $0x48] sm:$0xff]  ;;  %v397_v31 = vld [vmem:[#allocation10 + $0x40] sm:$0xff]  ;;  %v396_v32 = vld [vmem:[#allocation10 + $0x38] sm:$0xff]  ;;  %p947_p3 = scmp.le.s32.totalorder %s1497_s18, 0 }
 0x14d   : > { %1083 = vmatprep.subr.mxu0 %v1515_v24  ;;  %v395_v33 = vld [vmem:[#allocation10 + $0x30] sm:$0xff]  ;;  %v394_v34 = vld [vmem:[#allocation10 + $0x28] sm:$0xff]  ;;  %v380_v36 = vld [vmem:[%s1688_s7] sm:$0xff]  ;;  %s479_s12 = scalar_select %p478_p6, 1, 0 }
 0x14e   : > { %1084 = vmatpush3.msra.mxu0 %v403_v25  ;;  %v393_v39 = vld [vmem:[#allocation10 + $0x20] sm:$0xff]  ;;  %v392_v42 = vld [vmem:[#allocation10 + $0x18] sm:$0xff]  ;;  %v391_v43 = vld [vmem:[#allocation10 + $0x10] sm:$0xff] }
 0x14f   : > { %1085 = vmatprep.subr.mxu0 %v1515_v24  ;;  %v390_v45 = vld [vmem:[#allocation10 + $0x8] sm:$0xff]  ;;  %v389_v46 = vld [vmem:[#allocation10] sm:$0xff]  ;;  %v480_v49 = vstv %s479_s12 }
 0x150   : > { %1086 = vmatpush3.msra.mxu0 %v402_v26  ;;  %v377_v35 = vld [vmem:[#allocation2] sm:$0xff]  ;;  %vm481_vm3 = vcmp.eq.s32.totalorder %v480_v49, 1 }
 0x151   : > { %1087 = vmatprep.subr.mxu0 %v1515_v24  ;;  %s383_s10 = ssub.f32 1.0, %s379_s24  ;;  %v381_v37 = vstv %s379_s24 }
 0x152   : > { %1088 = vmatpush3.msra.mxu0 %v401_v27  ;;  %v382_v40 = vmul.f32 %v381_v37, %v380_v36 }
 0x153   : > { %1089 = vmatprep.subr.mxu0 %v1515_v24  ;;  %v384_v38 = vstv %s383_s10 }
 0x154   : > { %1090 = vmatpush3.msra.mxu0 %v400_v28  ;;  %v385_v41 = vmul.f32 %v384_v38, %v377_v35 }
 0x155   : > { %1091 = vmatprep.subr.mxu0 %v1515_v24 }
 0x156   : > { %1092 = vmatpush3.msra.mxu0 %v399_v29  ;;  %v386_v44 = vadd.f32 %v385_v41, %v382_v40 }
 0x157   : > { %1093 = vmatprep.subr.mxu0 %v1515_v24 }
 0x158   : > { %1094 = vmatpush3.msra.mxu0 %v398_v30  ;;  %v388_v47 = vsel %vm387_vm2, %v386_v44, %v377_v35 }
 0x159   : > { %1095 = vmatprep.subr.mxu0 %v1515_v24  ;;  %v475_v48 = vmul.f32 0.99, %v388_v47 }
 0x15a   : > { %1096 = vmatpush3.msra.mxu0 %v397_v31 }
 0x15b   : > { %1097 = vmatprep.subr.mxu0 %v1515_v24 }
 0x15c   : > { %1098 = vmatpush3.msra.mxu0 %v396_v32 }
 0x15d   : > { %1099 = vmatprep.subr.mxu0 %v1515_v24 }
 0x15e   : > { %1100 = vmatpush3.msra.mxu0 %v395_v33 }
 0x15f   : > { %1101 = vmatprep.subr.mxu0 %v1515_v24 }
 0x160   : > { %1102 = vmatpush3.msra.mxu0 %v394_v34 }
 0x161   : > { %1103 = vmatprep.subr.mxu0 %v1515_v24 }
 0x162   : > { %1104 = vmatpush3.msra.mxu0 %v393_v39 }
 0x163   : > { %1105 = vmatprep.subr.mxu0 %v1515_v24 }
 0x164   : > { %1106 = vmatpush3.msra.mxu0 %v392_v42 }
 0x165   : > { %1107 = vmatprep.subr.mxu0 %v1515_v24 }
 0x166   : > { %1108 = vmatpush3.msra.mxu0 %v391_v43 }
 0x167   : > { %1109 = vmatprep.subr.mxu0 %v1515_v24 }
 0x168   : > { %1110 = vmatpush3.msra.mxu0 %v390_v45 }
 0x169   : > { %1111 = vmatprep.subr.mxu0 %v1515_v24 }
 0x16a   : > { %1112 = vmatpush3.msra.mxu0 %v389_v46 }
 0x16b   : > { %1114 = vmatmul.mubr.f32.vlgmr.msra.gmra.mxu0 %v388_v47 }
 0x22b   : > { %v471_v50 = vpop.f32.mrf.mxu0 }
 0x22c   : > { %v476_v51 = vmul.f32 0.01, %v471_v50  ;;  %485 = sbr.rel (%p947_p3) target bundleno = 562 (0x232), region = 60 }
 0x22d   : > { %v1115_v52 = vpop.f32.mrf.mxu0 }
 0x22e   : > { %v477_v53 = vadd.f32 %v476_v51, %v475_v48 }
 0x230   : > { %v1727_v54 = vsel %vm481_vm3, %v477_v53, %v377_v35 }
 0x231   : > { %486 = vst [vmem:[%s1698_s8] sm:$0xff] %v477_v53 }
 0x232 PF: > { %1116 = vmatprep.subr.mxu1 %v1515_v24  ;;  %v1732_v55 = vld [vmem:[#allocation10 + $0x78] sm:$0xff]  ;;  %v1734_v56 = vld [vmem:[#allocation10 + $0x70] sm:$0xff]  ;;  %1148 = vmatprep.mubr.msk.f32.mxu1 %vm1516_vm1, %v1515_v24  ;;  %v1741_v57 = vld [vmem:[#allocation10 + $0x68] sm:$0xff]  ;;  %s487_s14 = sadd.s32 1, %s1707_s21  ;;  %s589_s29 = sadd.s32 2, %s1707_s21 }
 0x233   : > { %1117 = vmatpush3.msra.mxu1 %v1732_v55  ;;  %1151 = vmatprep.subr.mxu0 %v1515_v24  ;;  %v1748_v58 = vld [vmem:[#allocation10 + $0x60] sm:$0xff]  ;;  %v1754_v59 = vld [vmem:[#allocation10 + $0x58] sm:$0xff]  ;;  %s1756_s23 = sld [smem:[#allocation3 + %s487_s14]]  ;;  %v1762_v60 = vld [vmem:[#allocation10 + $0x50] sm:$0xff]  ;;  %s691_s9 = sadd.s32 3, %s1707_s21 }
 0x234   : > { %1118 = vmatprep.subr.mxu1 %v1515_v24  ;;  %1152 = vmatpush3.msra.mxu0 %v1732_v55  ;;  %v1768_v61 = vld [vmem:[#allocation10 + $0x48] sm:$0xff]  ;;  %v1774_v62 = vld [vmem:[#allocation10 + $0x40] sm:$0xff]  ;;  %v1780_v63 = vld [vmem:[#allocation10 + $0x38] sm:$0xff]  ;;  %s590_s11 = sld [smem:[#allocation3 + %s589_s29]]  ;;  %s960_s27 = sshll.u32 %s1497_s18, 9 }
 0x235   : > { %1119 = vmatpush3.msra.mxu1 %v1734_v56  ;;  %1153 = vmatprep.subr.mxu0 %v1515_v24  ;;  %v1787_v0 = vld [vmem:[#allocation10 + $0x30] sm:$0xff]  ;;  %v1793_v1 = vld [vmem:[#allocation10 + $0x28] sm:$0xff]  ;;  %v502_v5 = vld [vmem:[#allocation10 + $0x20] sm:$0xff]  ;;  %s692_s30 = sld [smem:[#allocation3 + %s691_s9]]  ;;  %s809_s5 = sshll.u32 %s1698_s8, 4  ;;  %s1864_s5 = int_to_ptr.vmem [resolvable:$true] %s809_s5 }
 0x236   : > { %1120 = vmatprep.subr.mxu1 %v1515_v24  ;;  %1154 = vmatpush3.msra.mxu0 %v1734_v56  ;;  %v948_v2 = vld [vmem:[%s1688_s7 + $0x8] sm:$0xff]  ;;  %v501_v8 = vld [vmem:[#allocation10 + $0x18] sm:$0xff]  ;;  %v500_v9 = vld [vmem:[#allocation10 + $0x10] sm:$0xff]  ;;  %s1862_s24 = scalar_lea.hbm %s1919_s4, %s960_s27  ;;  %s1869_s18 = scalar_lea.sflag [#allocation5], %s247_s1 }
 0x237   : > { %1121 = vmatpush3.msra.mxu1 %v1741_v57  ;;  %1155 = vmatprep.subr.mxu0 %v1515_v24  ;;  %v499_v11 = vld [vmem:[#allocation10 + $0x8] sm:$0xff]  ;;  %v498_v12 = vld [vmem:[#allocation10] sm:$0xff]  ;;  %v950_v16 = vld [vmem:[%s1688_s7 + $0x10] sm:$0xff]  ;;  %s1413_s10 = scalar_lea.vmem %s1864_s5, 512  ;;  %p1943_p8 = scmp.ne.s32.totalorder %s1928_s25, 0 }
 0x238   : > { %1122 = vmatprep.subr.mxu1 %v1515_v24  ;;  %1156 = vmatpush3.msra.mxu0 %v1741_v57  ;;  %v952_v27 = vld [vmem:[%s1688_s7 + $0x18] sm:$0xff]  ;;  %p1414_p4 = scmp.ne.s32.totalorder %s1864_s5, %s1413_s10  ;;  %s1517_s12 = smov [#allocation11]  }
 0x239   : > { %1123 = vmatpush3.msra.mxu1 %v1748_v58  ;;  %1157 = vmatprep.subr.mxu0 %v1515_v24  ;;  %s493_s28 = ssub.f32 1.0, %s1756_s23  ;;  %v491_v3 = vstv %s1756_s23  ;;  %s1417_s14 = sshll.u32 %s1517_s12, 4  ;;  %s1418_s14 = int_to_ptr.vmem [resolvable:$false] %s1417_s14 }
 0x23a   : > { %1124 = vmatprep.subr.mxu1 %v1515_v24  ;;  %1158 = vmatpush3.msra.mxu0 %v1748_v58  ;;  %v492_v6 = vmul.f32 %v948_v2, %v491_v3  ;;  %s595_s13 = ssub.f32 1.0, %s590_s11  ;;  %v593_v17 = vstv %s590_s11  ;;  %p1415_p10 = pnand %p1414_p4, %p1943_p8 }
 0x23b   : > { %1125 = vmatpush3.msra.mxu1 %v1754_v59  ;;  %1159 = vmatprep.subr.mxu0 %v1515_v24  ;;  %v494_v4 = vstv %s493_s28  ;;  %v594_v22 = vmul.f32 %v950_v16, %v593_v17  ;;  %s697_s0 = ssub.f32 1.0, %s692_s30  ;;  %v695_v28 = vstv %s692_s30  ;;  %s1419_s23 = scalar_lea.vmem %s1418_s14, 1024 }
 0x23c   : > { %1126 = vmatprep.subr.mxu1 %v1515_v24  ;;  %1160 = vmatpush3.msra.mxu0 %v1754_v59  ;;  %v495_v7 = vmul.f32 %v494_v4, %v1727_v54  ;;  %v596_v20 = vstv %s595_s13  ;;  %v696_v34 = vmul.f32 %v952_v27, %v695_v28  ;;  %p1416_p0 = pneg %p1415_p10  ;;  %p1420_p1 = scmp.lt.s32.totalorder %s1864_s5, %s1418_s14 }
 0x23d   : > { %1127 = vmatpush3.msra.mxu1 %v1762_v60  ;;  %1161 = vmatprep.subr.mxu0 %v1515_v24  ;;  %v698_v31 = vstv %s697_s0  ;;  %p1421_p9 = scmp.lt.s32.totalorder %s1419_s23, %s1413_s10 }
 0x23e   : > { %1128 = vmatprep.subr.mxu1 %v1515_v24  ;;  %1162 = vmatpush3.msra.mxu0 %v1762_v60  ;;  %v496_v10 = vadd.f32 %v495_v7, %v492_v6 }
 0x23f   : > { %1129 = vmatpush3.msra.mxu1 %v1768_v61  ;;  %1163 = vmatprep.subr.mxu0 %v1515_v24  ;;  %p1422_p7 = por %p1421_p9, %p1420_p1 }
 0x240   : > { %1130 = vmatprep.subr.mxu1 %v1515_v24  ;;  %1164 = vmatpush3.msra.mxu0 %v1768_v61  ;;  %v497_v13 = vsel %vm387_vm2, %v496_v10, %v1727_v54 }
 0x241   : > { %1131 = vmatpush3.msra.mxu1 %v1774_v62  ;;  %1165 = vmatprep.subr.mxu0 %v1515_v24  ;;  %v584_v14 = vmul.f32 0.99, %v497_v13  ;;  %p1423_p11 = pnand %p1422_p7, %p1416_p0 }
 0x242   : > { %1132 = vmatprep.subr.mxu1 %v1515_v24  ;;  %1166 = vmatpush3.msra.mxu0 %v1774_v62 }
 0x243   : > { %1133 = vmatpush3.msra.mxu1 %v1780_v63  ;;  %1167 = vmatprep.subr.mxu0 %v1515_v24 }
 0x244   : > { %1134 = vmatprep.subr.mxu1 %v1515_v24  ;;  %1168 = vmatpush3.msra.mxu0 %v1780_v63 }
 0x245   : > { %1135 = vmatpush3.msra.mxu1 %v1787_v0  ;;  %1169 = vmatprep.subr.mxu0 %v1515_v24 }
 0x246   : > { %1136 = vmatprep.subr.mxu1 %v1515_v24  ;;  %1170 = vmatpush3.msra.mxu0 %v1787_v0 }
 0x247   : > { %1137 = vmatpush3.msra.mxu1 %v1793_v1  ;;  %1171 = vmatprep.subr.mxu0 %v1515_v24 }
 0x248   : > { %1138 = vmatprep.subr.mxu1 %v1515_v24  ;;  %1172 = vmatpush3.msra.mxu0 %v1793_v1 }
 0x249   : > { %1139 = vmatpush3.msra.mxu1 %v502_v5  ;;  %1173 = vmatprep.subr.mxu0 %v1515_v24 }
 0x24a   : > { %1140 = vmatprep.subr.mxu1 %v1515_v24  ;;  %1174 = vmatpush3.msra.mxu0 %v502_v5 }
 0x24b   : > { %1141 = vmatpush3.msra.mxu1 %v501_v8  ;;  %1175 = vmatprep.subr.mxu0 %v1515_v24 }
 0x24c   : > { %1142 = vmatprep.subr.mxu1 %v1515_v24  ;;  %1176 = vmatpush3.msra.mxu0 %v501_v8 }
 0x24d   : > { %1143 = vmatpush3.msra.mxu1 %v500_v9  ;;  %1177 = vmatprep.subr.mxu0 %v1515_v24 }
 0x24e   : > { %1144 = vmatprep.subr.mxu1 %v1515_v24  ;;  %1178 = vmatpush3.msra.mxu0 %v500_v9 }
 0x24f   : > { %1145 = vmatpush3.msra.mxu1 %v499_v11  ;;  %1179 = vmatprep.subr.mxu0 %v1515_v24 }
 0x250   : > { %1146 = vmatprep.subr.mxu1 %v1515_v24  ;;  %1180 = vmatpush3.msra.mxu0 %v499_v11 }
 0x251   : > { %1147 = vmatpush3.msra.mxu1 %v498_v12  ;;  %1181 = vmatprep.subr.mxu0 %v1515_v24 }
 0x252   : > { %1149 = vmatmul.mubr.f32.vlgmr.msra.gmra.mxu1 %v497_v13  ;;  %1182 = vmatpush3.msra.mxu0 %v498_v12 }
 0x253   : > { %1183 = vmatprep.mubr.msk.f32.mxu0 %vm1516_vm1, %v1515_v24  ;;  %1186 = vmatprep.subr.mxu1 %v1515_v24 }
 0x254   : > { %1187 = vmatpush3.msra.mxu1 %v1732_v55  ;;  %1218 = vmatprep.mubr.msk.f32.mxu1 %vm1516_vm1, %v1515_v24 }
 0x255   : > { %1188 = vmatprep.subr.mxu1 %v1515_v24 }
 0x256   : > { %1189 = vmatpush3.msra.mxu1 %v1734_v56 }
 0x257   : > { %1190 = vmatprep.subr.mxu1 %v1515_v24 }
 0x258   : > { %1191 = vmatpush3.msra.mxu1 %v1741_v57 }
 0x259   : > { %1192 = vmatprep.subr.mxu1 %v1515_v24 }
 0x25a   : > { %1193 = vmatpush3.msra.mxu1 %v1748_v58 }
 0x25b   : > { %1194 = vmatprep.subr.mxu1 %v1515_v24 }
 0x25c   : > { %1195 = vmatpush3.msra.mxu1 %v1754_v59 }
 0x25d   : > { %1196 = vmatprep.subr.mxu1 %v1515_v24 }
 0x25e   : > { %1197 = vmatpush3.msra.mxu1 %v1762_v60 }
 0x25f   : > { %1198 = vmatprep.subr.mxu1 %v1515_v24 }
 0x260   : > { %1199 = vmatpush3.msra.mxu1 %v1768_v61 }
 0x261   : > { %1200 = vmatprep.subr.mxu1 %v1515_v24 }
 0x262   : > { %1201 = vmatpush3.msra.mxu1 %v1774_v62 }
 0x263   : > { %1202 = vmatprep.subr.mxu1 %v1515_v24 }
 0x264   : > { %1203 = vmatpush3.msra.mxu1 %v1780_v63 }
 0x265   : > { %1204 = vmatprep.subr.mxu1 %v1515_v24 }
 0x266   : > { %1205 = vmatpush3.msra.mxu1 %v1787_v0 }
 0x267   : > { %1206 = vmatprep.subr.mxu1 %v1515_v24 }
 0x268   : > { %1207 = vmatpush3.msra.mxu1 %v1793_v1 }
 0x269   : > { %1208 = vmatprep.subr.mxu1 %v1515_v24 }
 0x26a   : > { %1209 = vmatpush3.msra.mxu1 %v502_v5 }
 0x26b   : > { %1210 = vmatprep.subr.mxu1 %v1515_v24 }
 0x26c   : > { %1211 = vmatpush3.msra.mxu1 %v501_v8 }
 0x26d   : > { %1212 = vmatprep.subr.mxu1 %v1515_v24 }
 0x26e   : > { %1213 = vmatpush3.msra.mxu1 %v500_v9 }
 0x26f   : > { %1214 = vmatprep.subr.mxu1 %v1515_v24 }
 0x270   : > { %1215 = vmatpush3.msra.mxu1 %v499_v11 }
 0x271   : > { %1216 = vmatprep.subr.mxu1 %v1515_v24 }
 0x272   : > { %1217 = vmatpush3.msra.mxu1 %v498_v12 }
 0x312   : > { %v580_v15 = vpop.f32.mrf.mxu1 }
 0x313   : > { %v585_v18 = vmul.f32 0.01, %v580_v15 }
 0x314   : > { %v1150_v19 = vpop.f32.mrf.mxu1 }
 0x315   : > { %v586_v21 = vadd.f32 %v585_v18, %v584_v14 }
 0x317   : > { %949 = vst [vmem:[%s1698_s8 + $0x8] sm:$0xff] %v586_v21  ;;  %v597_v23 = vmul.f32 %v596_v20, %v586_v21 }
 0x319   : > { %v598_v25 = vadd.f32 %v597_v23, %v594_v22 }
 0x31b   : > { %v599_v24 = vsel %vm387_vm2, %v598_v25, %v586_v21 }
 0x31c   : > { %1184 = vmatmul.mubr.f32.vlgmr.msra.gmra.mxu0 %v599_v24  ;;  %v686_v29 = vmul.f32 0.99, %v599_v24 }
 0x3dc   : > { %v682_v26 = vpop.f32.mrf.mxu0 }
 0x3dd   : > { %v687_v30 = vmul.f32 0.01, %v682_v26 }
 0x3de   : > { %v1185_v32 = vpop.f32.mrf.mxu0 }
 0x3df   : > { %v688_v33 = vadd.f32 %v687_v30, %v686_v29 }
 0x3e1   : > { %951 = vst [vmem:[%s1698_s8 + $0x10] sm:$0xff] %v688_v33  ;;  %v699_v35 = vmul.f32 %v698_v31, %v688_v33 }
 0x3e3   : > { %v700_v36 = vadd.f32 %v699_v35, %v696_v34 }
 0x3e5   : > { %v701_v37 = vsel %vm387_vm2, %v700_v36, %v688_v33 }
 0x3e6   : > { %1219 = vmatmul.mubr.f32.vlgmr.msra.gmra.mxu1 %v701_v37  ;;  %v788_v39 = vmul.f32 0.99, %v701_v37 }
 0x4a6   : > { %v784_v38 = vpop.f32.mrf.mxu1 }
 0x4a7   : > { %v789_v40 = vmul.f32 0.01, %v784_v38 }
 0x4a8   : > { %v1220_v41 = vpop.f32.mrf.mxu1 }
 0x4a9   : > { %v790_v42 = vadd.f32 %v789_v40, %v788_v39 }
 0x4ab   : > { %953 = vst [vmem:[%s1698_s8 + $0x18] sm:$0xff] %v790_v42  ;;  %793 = vst [vmem:[#allocation2] sm:$0xff] %v790_v42 }
 0x4ac   : > { %1426 = shalt.err (!%p1423_p11)
}
 0x4ad   : > { %s1427_s1 = scalar_lea.hbm %s1862_s24, 512  ;;  %s1431_s29 = scalar_lea.hbm %s1919_s4, 1024 }
 0x4ae   : > { %p1428_p5 = scmp.ne.s32.totalorder %s1862_s24, %s1427_s1  ;;  %p1432_p13 = scmp.lt.s32.totalorder %s1862_s24, %s1919_s4 }
 0x4af   : > { %p1433_p6 = scmp.lt.s32.totalorder %s1431_s29, %s1427_s1 }
 0x4b0   : > { %p1429_p12 = pnand %p1428_p5, %p1943_p8 }
 0x4b1   : > { %p1434_p3 = por %p1433_p6, %p1432_p13 }
 0x4b2   : > { %p1430_p2 = pneg %p1429_p12 }
 0x4b4   : > { %p1435_p4 = pnand %p1434_p3, %p1430_p2 }
 0x4b6   : > { %1438 = shalt.err (!%p1435_p4)
}
 0x4b7   : > { %s1518_s9 = smov 128   ;;  %s1519_s30 = smov 8  }
 0x4b8   : > { %1235 = dma.vmem_to_hbm [thread:$0]  (%p1943_p8), %s1864_s5, 512, %s1862_s24, %s1869_s18, %s1518_s9, %s1518_s9, %s1519_s30  }
 0x4b9 PF: > { %s824_s0 = sand.u32 1, %s1485_s15   ;;  %p1944_p10 = scmp.ne.s32.totalorder %s1929_s26, 0 }
 0x4ba   : > { %p1945_p0 = scmp.ge.s32.totalorder %s1505_s20, 2  ;;  %s825_s27 = scalar_lea.sflag [#allocation5], %s824_s0 }
 0x4bc   : > { %p1252_p1 = pnand %p1945_p0, %p1944_p10 }
 0x4be   : > { %p1253_p9 = pneg %p1252_p1 }
 0x4c0   : > { %1480 = dma.done.wait (%p1253_p9), %s825_s27, 512  }
 0x4c1   : > { %1482 = vsyncadd (%p1253_p9), %s825_s27, 4294966784  ;;  %s22_s20 = sadd.s32 1, %s1505_s20   ;;  %s1946_s15 = smov %s1489_s16 }
 0x4c2   : > { %p19_p7 = scmp.ge.s32.totalorder %s22_s20, 4   ;;  %s1947_s16 = smov %s1493_s17 }
 0x4c3   : > { %s1948_s17 = smov %s1665_s22  ;;  %s1949_s18 = smov %s1501_s19 }
 0x4c4   : > { %s1950_s19 = smov %s1952_s6  ;;  %21 = sbr.rel (!%p19_p7) target bundleno = 11 (0xb), region = 110 }
 0x4c9   :  { %830 = vsyncpa [#allocation4], 1 }
 0x4ca   :  { %832 = vsyncpa [#allocation4 + $0x1], 1 }
 0x4cb   :  { %833 = vsyncpa [#allocation9], 1 }
 0x4cc   :  { %835 = vsyncpa [#allocation9 + $0x1], 1 }
 0x4cd   :  { %836 = vsyncpa [#allocation5], 1 }
 0x4ce   :  { %838 = vsyncpa [#allocation5 + $0x1], 1 }
 0x4cf   :  { %839 = vsyncpa [#allocation6], 1 }
 0x4d0   :  { %841 = vsyncpa [#allocation6 + $0x1], 1 }

</bundles_post_ra>
